<compile_context>
chip_gen: v5e
topology: v5e:2x2
jax: 0.10.0
libtpu: 0.0.40
codegen_flags: <defaults>
</compile_context>

<pallas_src>
import functools

import jax
import jax.numpy as jnp
import numpy as np
from jax.experimental import pallas as pl
from jax.experimental.pallas import tpu as pltpu

# TODO(synk): Wav2Vec2BertModel (pretrained Conformer backbone) has no clean
# in-script Pallas equivalent; the kernel consumes its last_hidden_state.

_LANE = 128
_SUB_CHUNK = 64          # rows reduced per step: keeps the f32 temp to a few vregs
_MIB = 1024 * 1024


def _round_up(x, m):
    return ((x + m - 1) // m) * m


def _pad_cols(a, n):
    pad = n - a.shape[-1]
    if pad == 0:
        return a
    return jnp.pad(a, ((0, 0), (0, pad)))


def _vmem_capacity_bytes():
    """Physical per-core VMEM; conservative (v7x 64 MiB) fallback if query fails."""
    try:
        cap = int(getattr(pltpu.get_tpu_info(), "vmem_capacity_bytes", 0))
        if cap > 0:
            return cap
    except Exception:
        pass
    return 64 * _MIB


def _grl_head_kernel(hs_ref, wd_ref, bd_ref, wo_ref, bo_ref, ws_ref, bs_ref,
                     rf_ref, spk_ref, acc_ref, *,
                     t_total, t_tile, inv_t, head_dtype):
    """Grid = (batch tiles ["parallel"], T tiles ["arbitrary" reduction])."""
    t = pl.program_id(1)
    nt = pl.num_programs(1)

    @pl.when(t == 0)
    def _():
        acc_ref[...] = jnp.zeros_like(acc_ref)

    # ---- streamed mean-pool reduction -------------------------------------
    # Reduce the (b_tile, n_rows, H) block into the f32 accumulator in small
    # sub-chunks so the f32 upcast never materializes a full-block temporary.
    def reduce_rows(n_rows):
        sub = min(_SUB_CHUNK, n_rows)
        n_full = n_rows // sub

        def add_chunk(start, size):
            blk = hs_ref[:, pl.ds(start, size), :].astype(jnp.float32)
            acc_ref[...] += jnp.sum(blk, axis=1)

        if n_full == 1:
            add_chunk(0, sub)
        elif n_full > 1:
            @pl.loop(0, n_full)
            def _(c):
                add_chunk(pl.multiple_of(c * sub, sub), sub)
        rem = n_rows - n_full * sub
        if rem > 0:
            add_chunk(n_full * sub, rem)

    rem_t = t_total % t_tile
    if rem_t == 0:
        reduce_rows(t_tile)                      # no ragged tile: single fast path
    else:
        @pl.when(t < nt - 1)
        def _():
            reduce_rows(t_tile)                  # unmasked fast path

        @pl.when(t == nt - 1)
        def _():
            reduce_rows(rem_t)                   # only the valid rows of the last tile

    # ---- epilogue: heads on the pooled embedding (hidden under DMA stream) --
    @pl.when(t == nt - 1)
    def _():
        emb = acc_ref[...] * inv_t                                    # (b_tile, H) f32
        emb_c = emb.astype(head_dtype)
        x = jnp.tanh(
            jnp.dot(emb_c, wd_ref[...], preferred_element_type=jnp.float32)
            + bd_ref[...])                                            # (b_tile, H) f32
        rf_ref[...] = (
            jnp.dot(x.astype(head_dtype), wo_ref[...],
                    preferred_element_type=jnp.float32) + bo_ref[...])
        spk_ref[...] = (
            jnp.dot(emb_c, ws_ref[...],
                    preferred_element_type=jnp.float32) + bs_ref[...])


def wav2vec2bert_grl_heads(last_hidden_state, params, *, t_tile=None, b_tile=None,
                           head_dtype=jnp.bfloat16):
    """last_hidden_state: (B, T, H). Returns (rf_logits, spk_logits)."""
    B, T, H = last_hidden_state.shape
    num_labels = params["out_proj_w"].shape[0]
    n_spk = params["spk_w"].shape[0]
    hs_item = jnp.dtype(last_hidden_state.dtype).itemsize
    w_item = jnp.dtype(head_dtype).itemsize

    # ---- batch tiling: give the "parallel" axis >= 2 steps when the batch is
    # large enough so v7x's two TensorCores both get work (no-op on 1-TC chips).
    if b_tile is None:
        b_tile = B if B < 16 else _round_up(pl.cdiv(B, 2), 8)

    # ---- lane-dense padded head widths -------------------------------------
    out_pad = _round_up(max(num_labels, 1), _LANE)
    spk_pad = _round_up(max(n_spk, 1), _LANE)

    # ---- generation-aware VMEM budget & t_tile derivation -------------------
    vmem_cap = _vmem_capacity_bytes()
    weight_elems = H * H + H * out_pad + H * spk_pad
    bias_bytes = 4 * (H + out_pad + spk_pad)
    resident = (2 * (weight_elems * w_item + bias_bytes)        # weights+biases (worst case 2x)
                + 2 * b_tile * (out_pad + spk_pad) * 4          # double-buffered outputs
                + b_tile * H * 4                                # accumulator scratch
                + b_tile * _SUB_CHUNK * H * 4 + b_tile * H * 4)  # reduction temporaries
    if t_tile is None:
        budget = int(0.6 * vmem_cap)
        per_row = 2 * b_tile * H * hs_item                      # double-buffered stream rows
        t_cap = max((budget - resident) // per_row, _SUB_CHUNK)
        if t_cap >= T:
            t_tile = T
        else:
            t_tile = min(max((t_cap // _SUB_CHUNK) * _SUB_CHUNK, _SUB_CHUNK), 2048)
    t_tile = min(t_tile, T)

    # ---- weight plumbing: pre-transpose to [in, out], lane-pad head cols ----
    wd_t = jnp.asarray(params["dense_w"], jnp.float32).T.astype(head_dtype)      # (H, H)
    bd = jnp.asarray(params["dense_b"], jnp.float32).reshape(1, H)
    wo_t = _pad_cols(jnp.asarray(params["out_proj_w"], jnp.float32).T,
                     out_pad).astype(head_dtype)                                 # (H, OUT_PAD)
    bo = _pad_cols(jnp.asarray(params["out_proj_b"], jnp.float32).reshape(1, -1), out_pad)
    ws_t = _pad_cols(jnp.asarray(params["spk_w"], jnp.float32).T,
                     spk_pad).astype(head_dtype)                                 # (H, SPK_PAD)
    bs = _pad_cols(jnp.asarray(params["spk_b"], jnp.float32).reshape(1, -1), spk_pad)

    grid = (pl.cdiv(B, b_tile), pl.cdiv(T, t_tile))

    kernel = functools.partial(
        _grl_head_kernel, t_total=T, t_tile=t_tile, inv_t=float(1.0 / T),
        head_dtype=head_dtype)

    est_bytes = resident + 2 * b_tile * t_tile * H * hs_item
    # Clamp the scoped limit to 80% of the real per-core VMEM (64 MiB on v7x).
    vmem_limit = int(min(max(int(1.25 * est_bytes), 32 * _MIB), int(0.8 * vmem_cap)))

    out_shape = (jax.ShapeDtypeStruct((B, out_pad), jnp.float32),
                 jax.ShapeDtypeStruct((B, spk_pad), jnp.float32))

    def _run(single_buffer_weights):
        def const_spec(shape):
            zero = (0,) * len(shape)
            if single_buffer_weights:
                # Weights/biases never change across the grid: single-buffer them.
                return pl.BlockSpec(shape, lambda b, t, z=zero: z,
                                    pipeline_mode=pl.Buffered(1))
            return pl.BlockSpec(shape, lambda b, t, z=zero: z)

        return pl.pallas_call(
            kernel,
            out_shape=out_shape,
            grid_spec=pltpu.PrefetchScalarGridSpec(
                num_scalar_prefetch=0,
                grid=grid,
                in_specs=[
                    pl.BlockSpec((b_tile, t_tile, H), lambda b, t: (b, t, 0)),
                    const_spec((H, H)),
                    const_spec((1, H)),
                    const_spec((H, out_pad)),
                    const_spec((1, out_pad)),
                    const_spec((H, spk_pad)),
                    const_spec((1, spk_pad)),
                ],
                out_specs=[
                    pl.BlockSpec((b_tile, out_pad), lambda b, t: (b, 0)),
                    pl.BlockSpec((b_tile, spk_pad), lambda b, t: (b, 0)),
                ],
                scratch_shapes=[pltpu.VMEM((b_tile, H), jnp.float32)],
            ),
            compiler_params=pltpu.CompilerParams(
                dimension_semantics=("parallel", "arbitrary"),
                vmem_limit_bytes=vmem_limit,
            ),
        )(last_hidden_state, wd_t, bd, wo_t, bo, ws_t, bs)

    try:
        rf_pad, spk_pad_out = _run(single_buffer_weights=True)
    except Exception:
        # pl.Buffered(1) not supported by this jax build: fall back to default buffering.
        rf_pad, spk_pad_out = _run(single_buffer_weights=False)

    # Slice the lane-padded head outputs back to their logical widths.
    return rf_pad[:, :num_labels], spk_pad_out[:, :n_spk]


def init_params(key, hidden_size, num_labels, n_spk):
    ks = jax.random.split(key, 6)
    scale = 1.0 / np.sqrt(hidden_size)
    return {
        # PyTorch nn.Linear convention: weight is (out_features, in_features)
        "dense_w":    jax.random.normal(ks[0], (hidden_size, hidden_size), jnp.float32) * scale,
        "dense_b":    jax.random.normal(ks[1], (1, hidden_size), jnp.float32) * scale,
        "out_proj_w": jax.random.normal(ks[2], (num_labels, hidden_size), jnp.float32) * scale,
        "out_proj_b": jax.random.normal(ks[3], (1, num_labels), jnp.float32) * scale,
        "spk_w":      jax.random.normal(ks[4], (n_spk, hidden_size), jnp.float32) * scale,
        "spk_b":      jax.random.normal(ks[5], (1, n_spk), jnp.float32) * scale,
    }


def reference(last_hidden_state, params):
    emb = jnp.mean(last_hidden_state.astype(jnp.float32), axis=1)
    x = jnp.tanh(emb @ params["dense_w"].T + params["dense_b"])
    rf = x @ params["out_proj_w"].T + params["out_proj_b"]
    spk = emb @ params["spk_w"].T + params["spk_b"]
    return rf, spk


if __name__ == "__main__":
    B, T, H = 2, 20, 32    # batch, sequence length, hidden_size (small test shapes)
    NUM_LABELS = 2         # Wav2Vec2BERT.num_labels
    N_SPK = 4              # GRL speaker head
    T_TILE = 8             # forces 3 grid steps incl. a ragged (4-row) last tile

    key = jax.random.PRNGKey(0)
    k_hs, k_p = jax.random.split(key)
    # Stand-in for Wav2Vec2BertModel(...).last_hidden_state
    hs_f32 = jax.random.normal(k_hs, (B, T, H), jnp.float32)
    params = init_params(k_p, H, NUM_LABELS, N_SPK)

    # 1) exact path: f32 stream + f32 head weights, ragged T tiling (tight check).
    rf_logits, spk_logits = wav2vec2bert_grl_heads(
        hs_f32, params, t_tile=T_TILE, head_dtype=jnp.float32)
    jax.block_until_ready((rf_logits, spk_logits))
    rf_ref, spk_ref = reference(hs_f32, params)
    np.testing.assert_allclose(np.asarray(rf_logits), np.asarray(rf_ref), rtol=1e-5, atol=1e-5)
    np.testing.assert_allclose(np.asarray(spk_logits), np.asarray(spk_ref), rtol=1e-5, atol=1e-5)
    assert rf_logits.shape == (B, NUM_LABELS)
    assert spk_logits.shape == (B, N_SPK)

    # 2) production path: bf16 stream end-to-end + bf16 head weights, auto tiling.
    hs_bf16 = hs_f32.astype(jnp.bfloat16)
    rf_bf, spk_bf = wav2vec2bert_grl_heads(hs_bf16, params)
    jax.block_until_ready((rf_bf, spk_bf))
    rf_ref2, spk_ref2 = reference(hs_bf16, params)
    np.testing.assert_allclose(np.asarray(rf_bf), np.asarray(rf_ref2), rtol=2e-2, atol=2e-2)
    np.testing.assert_allclose(np.asarray(spk_bf), np.asarray(spk_ref2), rtol=2e-2, atol=2e-2)

    print("KERNEL_OK")
</pallas_src>

<mosaic_0001>
module attributes {stable_mosaic.version = 11 : i64} {
  func.func @_grl_head_kernel(%arg0: i32, %arg1: i32, %arg2: memref<2x8x32xf32, #tpu.memory_space<vmem>>, %arg3: memref<32x32xf32, #tpu.memory_space<vmem>>, %arg4: memref<1x32xf32, #tpu.memory_space<vmem>>, %arg5: memref<32x128xf32, #tpu.memory_space<vmem>>, %arg6: memref<1x128xf32, #tpu.memory_space<vmem>>, %arg7: memref<32x128xf32, #tpu.memory_space<vmem>>, %arg8: memref<1x128xf32, #tpu.memory_space<vmem>>, %arg9: memref<2x128xf32, #tpu.memory_space<vmem>>, %arg10: memref<2x128xf32, #tpu.memory_space<vmem>>, %arg11: memref<2x32xf32, #tpu.memory_space<vmem>>) attributes {dimension_semantics = [#tpu.dimension_semantics<parallel>, #tpu.dimension_semantics<arbitrary>], iteration_bounds = array<i64: 1, 3>, scalar_prefetch = 0 : i64, scratch_operands = 1 : i64, tpu.core_type = #tpu.core_type<tc>, window_params = [{transform_indices = @transform_0, window_bounds = array<i64: 2, 8, 32>}, {pipeline_mode = #tpu.pipeline_mode<synchronous>, transform_indices = @transform_1, window_bounds = array<i64: 32, 32>}, {pipeline_mode = #tpu.pipeline_mode<synchronous>, transform_indices = @transform_2, window_bounds = array<i64: 1, 32>}, {pipeline_mode = #tpu.pipeline_mode<synchronous>, transform_indices = @transform_3, window_bounds = array<i64: 32, 128>}, {pipeline_mode = #tpu.pipeline_mode<synchronous>, transform_indices = @transform_4, window_bounds = array<i64: 1, 128>}, {pipeline_mode = #tpu.pipeline_mode<synchronous>, transform_indices = @transform_5, window_bounds = array<i64: 32, 128>}, {pipeline_mode = #tpu.pipeline_mode<synchronous>, transform_indices = @transform_6, window_bounds = array<i64: 1, 128>}, {transform_indices = @transform_7, window_bounds = array<i64: 2, 128>}, {transform_indices = @transform_8, window_bounds = array<i64: 2, 128>}]} {
    %c0_i32 = arith.constant 0 : i32
    %0 = arith.cmpi eq, %arg1, %c0_i32 : i32
    %1 = arith.extui %0 : i1 to i32
    %c0_i32_0 = arith.constant 0 : i32
    %2 = arith.cmpi ne, %1, %c0_i32_0 : i32
    scf.if %2 {
      %cst = arith.constant 0.000000e+00 : f32
      %12 = vector.broadcast %cst : f32 to vector<2x32xf32>
      %c0 = arith.constant 0 : index
      %c0_6 = arith.constant 0 : index
      %13 = vector.load %arg11[%c0, %c0_6] : memref<2x32xf32, #tpu.memory_space<vmem>>, vector<2x32xf32>
      tpu.vector_store %arg11[%c0, %c0_6], %12 {strides = array<i32>} : memref<2x32xf32, #tpu.memory_space<vmem>>, vector<2x32xf32>,
    } else {
    }
    %c2_i32 = arith.constant 2 : i32
    %3 = arith.cmpi slt, %arg1, %c2_i32 : i32
    %4 = arith.extui %3 : i1 to i32
    %c0_i32_1 = arith.constant 0 : i32
    %5 = arith.cmpi ne, %4, %c0_i32_1 : i32
    scf.if %5 {
      %c0 = arith.constant 0 : index
      %c0_6 = arith.constant 0 : index
      %c0_7 = arith.constant 0 : index
      %12 = vector.load %arg2[%c0, %c0_6, %c0_7] : memref<2x8x32xf32, #tpu.memory_space<vmem>>, vector<2x8x32xf32>
      %c0_8 = arith.constant 0 : index
      %c0_9 = arith.constant 0 : index
      %13 = vector.load %arg11[%c0_8, %c0_9] : memref<2x32xf32, #tpu.memory_space<vmem>>, vector<2x32xf32>
      %cst = arith.constant dense<0.000000e+00> : vector<2x32xf32>
      %14 = vector.multi_reduction <add>, %12, %cst [1] : vector<2x8x32xf32> to vector<2x32xf32>
      %15 = arith.addf %13, %14 : vector<2x32xf32>
      %c0_10 = arith.constant 0 : index
      %c0_11 = arith.constant 0 : index
      %16 = vector.load %arg11[%c0_10, %c0_11] : memref<2x32xf32, #tpu.memory_space<vmem>>, vector<2x32xf32>
      tpu.vector_store %arg11[%c0_10, %c0_11], %15 {strides = array<i32>} : memref<2x32xf32, #tpu.memory_space<vmem>>, vector<2x32xf32>,
    } else {
    }
    %c2_i32_2 = arith.constant 2 : i32
    %6 = arith.cmpi eq, %arg1, %c2_i32_2 : i32
    %7 = arith.extui %6 : i1 to i32
    %c0_i32_3 = arith.constant 0 : i32
    %8 = arith.cmpi ne, %7, %c0_i32_3 : i32
    scf.if %8 {
      %c0 = arith.constant 0 : index
      %c0_6 = arith.constant 0 : index
      %c0_7 = arith.constant 0 : index
      %12 = vector.load %arg2[%c0, %c0_6, %c0_7] : memref<2x8x32xf32, #tpu.memory_space<vmem>>, vector<2x4x32xf32>
      %c0_8 = arith.constant 0 : index
      %c0_9 = arith.constant 0 : index
      %13 = vector.load %arg11[%c0_8, %c0_9] : memref<2x32xf32, #tpu.memory_space<vmem>>, vector<2x32xf32>
      %cst = arith.constant dense<0.000000e+00> : vector<2x32xf32>
      %14 = vector.multi_reduction <add>, %12, %cst [1] : vector<2x4x32xf32> to vector<2x32xf32>
      %15 = arith.addf %13, %14 : vector<2x32xf32>
      %c0_10 = arith.constant 0 : index
      %c0_11 = arith.constant 0 : index
      %16 = vector.load %arg11[%c0_10, %c0_11] : memref<2x32xf32, #tpu.memory_space<vmem>>, vector<2x32xf32>
      tpu.vector_store %arg11[%c0_10, %c0_11], %15 {strides = array<i32>} : memref<2x32xf32, #tpu.memory_space<vmem>>, vector<2x32xf32>,
    } else {
    }
    %c2_i32_4 = arith.constant 2 : i32
    %9 = arith.cmpi eq, %arg1, %c2_i32_4 : i32
    %10 = arith.extui %9 : i1 to i32
    %c0_i32_5 = arith.constant 0 : i32
    %11 = arith.cmpi ne, %10, %c0_i32_5 : i32
    scf.if %11 {
      %c0 = arith.constant 0 : index
      %c0_6 = arith.constant 0 : index
      %12 = vector.load %arg11[%c0, %c0_6] : memref<2x32xf32, #tpu.memory_space<vmem>>, vector<2x32xf32>
      %cst = arith.constant 5.000000e-02 : f32
      %13 = vector.broadcast %cst : f32 to vector<2x32xf32>
      %14 = arith.mulf %12, %13 : vector<2x32xf32>
      %c0_7 = arith.constant 0 : index
      %c0_8 = arith.constant 0 : index
      %15 = vector.load %arg3[%c0_7, %c0_8] : memref<32x32xf32, #tpu.memory_space<vmem>>, vector<32x32xf32>
      %cst_9 = arith.constant dense<0.000000e+00> : vector<2x32xf32>
      %16 = tpu.matmul %14, %15, %cst_9 {dimension_numbers = #tpu.dot_dimension_numbers<[1], [0], [0], [1], [0, 0, 1, 1], [], []>} : vector<2x32xf32>, vector<32x32xf32>, vector<2x32xf32> -> vector<2x32xf32>
      %c0_10 = arith.constant 0 : index
      %c0_11 = arith.constant 0 : index
      %17 = vector.load %arg4[%c0_10, %c0_11] : memref<1x32xf32, #tpu.memory_space<vmem>>, vector<1x32xf32>
      %18 = vector.broadcast %17 : vector<1x32xf32> to vector<2x32xf32>
      %19 = arith.addf %16, %18 : vector<2x32xf32>
      %20 = math.tanh %19 : vector<2x32xf32>
      %c0_12 = arith.constant 0 : index
      %c0_13 = arith.constant 0 : index
      %21 = vector.load %arg5[%c0_12, %c0_13] : memref<32x128xf32, #tpu.memory_space<vmem>>, vector<32x128xf32>
      %cst_14 = arith.constant dense<0.000000e+00> : vector<2x128xf32>
      %22 = tpu.matmul %20, %21, %cst_14 {dimension_numbers = #tpu.dot_dimension_numbers<[1], [0], [0], [1], [0, 0, 1, 1], [], []>} : vector<2x32xf32>, vector<32x128xf32>, vector<2x128xf32> -> vector<2x128xf32>
      %c0_15 = arith.constant 0 : index
      %c0_16 = arith.constant 0 : index
      %23 = vector.load %arg6[%c0_15, %c0_16] : memref<1x128xf32, #tpu.memory_space<vmem>>, vector<1x128xf32>
      %24 = vector.broadcast %23 : vector<1x128xf32> to vector<2x128xf32>
      %25 = arith.addf %22, %24 : vector<2x128xf32>
      %c0_17 = arith.constant 0 : index
      %c0_18 = arith.constant 0 : index
      %26 = vector.load %arg9[%c0_17, %c0_18] : memref<2x128xf32, #tpu.memory_space<vmem>>, vector<2x128xf32>
      tpu.vector_store %arg9[%c0_17, %c0_18], %25 {strides = array<i32>} : memref<2x128xf32, #tpu.memory_space<vmem>>, vector<2x128xf32>,
      %c0_19 = arith.constant 0 : index
      %c0_20 = arith.constant 0 : index
      %27 = vector.load %arg7[%c0_19, %c0_20] : memref<32x128xf32, #tpu.memory_space<vmem>>, vector<32x128xf32>
      %cst_21 = arith.constant dense<0.000000e+00> : vector<2x128xf32>
      %28 = tpu.matmul %14, %27, %cst_21 {dimension_numbers = #tpu.dot_dimension_numbers<[1], [0], [0], [1], [0, 0, 1, 1], [], []>} : vector<2x32xf32>, vector<32x128xf32>, vector<2x128xf32> -> vector<2x128xf32>
      %c0_22 = arith.constant 0 : index
      %c0_23 = arith.constant 0 : index
      %29 = vector.load %arg8[%c0_22, %c0_23] : memref<1x128xf32, #tpu.memory_space<vmem>>, vector<1x128xf32>
      %30 = vector.broadcast %29 : vector<1x128xf32> to vector<2x128xf32>
      %31 = arith.addf %28, %30 : vector<2x128xf32>
      %c0_24 = arith.constant 0 : index
      %c0_25 = arith.constant 0 : index
      %32 = vector.load %arg10[%c0_24, %c0_25] : memref<2x128xf32, #tpu.memory_space<vmem>>, vector<2x128xf32>
      tpu.vector_store %arg10[%c0_24, %c0_25], %31 {strides = array<i32>} : memref<2x128xf32, #tpu.memory_space<vmem>>, vector<2x128xf32>,
    } else {
    }
    return
  }
  func.func @transform_0(%arg0: i32, %arg1: i32) -> (i32, i32, i32) {
    %c0_i32 = arith.constant 0 : i32
    %c0_i32_0 = arith.constant 0 : i32
    return %arg0, %arg1, %c0_i32 : i32, i32, i32
  }
  func.func @transform_1(%arg0: i32, %arg1: i32) -> (i32, i32) {
    %c0_i32 = arith.constant 0 : i32
    %c0_i32_0 = arith.constant 0 : i32
    %c0_i32_1 = arith.constant 0 : i32
    return %c0_i32, %c0_i32_0 : i32, i32
  }
  func.func @transform_2(%arg0: i32, %arg1: i32) -> (i32, i32) {
    %c0_i32 = arith.constant 0 : i32
    %c0_i32_0 = arith.constant 0 : i32
    %c0_i32_1 = arith.constant 0 : i32
    return %c0_i32, %c0_i32_0 : i32, i32
  }
  func.func @transform_3(%arg0: i32, %arg1: i32) -> (i32, i32) {
    %c0_i32 = arith.constant 0 : i32
    %c0_i32_0 = arith.constant 0 : i32
    %c0_i32_1 = arith.constant 0 : i32
    return %c0_i32, %c0_i32_0 : i32, i32
  }
  func.func @transform_4(%arg0: i32, %arg1: i32) -> (i32, i32) {
    %c0_i32 = arith.constant 0 : i32
    %c0_i32_0 = arith.constant 0 : i32
    %c0_i32_1 = arith.constant 0 : i32
    return %c0_i32, %c0_i32_0 : i32, i32
  }
  func.func @transform_5(%arg0: i32, %arg1: i32) -> (i32, i32) {
    %c0_i32 = arith.constant 0 : i32
    %c0_i32_0 = arith.constant 0 : i32
    %c0_i32_1 = arith.constant 0 : i32
    return %c0_i32, %c0_i32_0 : i32, i32
  }
  func.func @transform_6(%arg0: i32, %arg1: i32) -> (i32, i32) {
    %c0_i32 = arith.constant 0 : i32
    %c0_i32_0 = arith.constant 0 : i32
    %c0_i32_1 = arith.constant 0 : i32
    return %c0_i32, %c0_i32_0 : i32, i32
  }
  func.func @transform_7(%arg0: i32, %arg1: i32) -> (i32, i32) {
    %c0_i32 = arith.constant 0 : i32
    %c0_i32_0 = arith.constant 0 : i32
    return %arg0, %c0_i32 : i32, i32
  }
  func.func @transform_8(%arg0: i32, %arg1: i32) -> (i32, i32) {
    %c0_i32 = arith.constant 0 : i32
    %c0_i32_0 = arith.constant 0 : i32
    return %arg0, %c0_i32 : i32, i32
  }
}

module attributes {stable_mosaic.version = 11 : i64} {
  func.func @_grl_head_kernel(%arg0: i32, %arg1: i32, %arg2: memref<2x8x32xf32, #tpu.memory_space<vmem>>, %arg3: memref<32x32xf32, #tpu.memory_space<vmem>>, %arg4: memref<1x32xf32, #tpu.memory_space<vmem>>, %arg5: memref<32x128xf32, #tpu.memory_space<vmem>>, %arg6: memref<1x128xf32, #tpu.memory_space<vmem>>, %arg7: memref<32x128xf32, #tpu.memory_space<vmem>>, %arg8: memref<1x128xf32, #tpu.memory_space<vmem>>, %arg9: memref<2x128xf32, #tpu.memory_space<vmem>>, %arg10: memref<2x128xf32, #tpu.memory_space<vmem>>, %arg11: memref<2x32xf32, #tpu.memory_space<vmem>>) attributes {dimension_semantics = [#tpu.dimension_semantics<parallel>, #tpu.dimension_semantics<arbitrary>], iteration_bounds = array<i64: 1, 3>, scalar_prefetch = 0 : i64, scratch_operands = 1 : i64, tpu.core_type = #tpu.core_type<tc>, window_params = [{transform_indices = @transform_0, window_bounds = array<i64: 2, 8, 32>}, {pipeline_mode = #tpu.pipeline_mode<synchronous>, transform_indices = @transform_1, window_bounds = array<i64: 32, 32>}, {pipeline_mode = #tpu.pipeline_mode<synchronous>, transform_indices = @transform_2, window_bounds = array<i64: 1, 32>}, {pipeline_mode = #tpu.pipeline_mode<synchronous>, transform_indices = @transform_3, window_bounds = array<i64: 32, 128>}, {pipeline_mode = #tpu.pipeline_mode<synchronous>, transform_indices = @transform_4, window_bounds = array<i64: 1, 128>}, {pipeline_mode = #tpu.pipeline_mode<synchronous>, transform_indices = @transform_5, window_bounds = array<i64: 32, 128>}, {pipeline_mode = #tpu.pipeline_mode<synchronous>, transform_indices = @transform_6, window_bounds = array<i64: 1, 128>}, {transform_indices = @transform_7, window_bounds = array<i64: 2, 128>}, {transform_indices = @transform_8, window_bounds = array<i64: 2, 128>}]} {
    %c0_i32 = arith.constant 0 : i32
    %0 = arith.cmpi eq, %arg1, %c0_i32 : i32
    %1 = arith.extui %0 : i1 to i32
    %c0_i32_0 = arith.constant 0 : i32
    %2 = arith.cmpi ne, %1, %c0_i32_0 : i32
    scf.if %2 {
      %cst = arith.constant 0.000000e+00 : f32
      %12 = vector.broadcast %cst : f32 to vector<2x32xf32>
      %c0 = arith.constant 0 : index
      %c0_6 = arith.constant 0 : index
      %13 = vector.load %arg11[%c0, %c0_6] : memref<2x32xf32, #tpu.memory_space<vmem>>, vector<2x32xf32>
      tpu.vector_store %arg11[%c0, %c0_6], %12 {strides = array<i32>} : memref<2x32xf32, #tpu.memory_space<vmem>>, vector<2x32xf32>,
    } else {
    }
    %c2_i32 = arith.constant 2 : i32
    %3 = arith.cmpi slt, %arg1, %c2_i32 : i32
    %4 = arith.extui %3 : i1 to i32
    %c0_i32_1 = arith.constant 0 : i32
    %5 = arith.cmpi ne, %4, %c0_i32_1 : i32
    scf.if %5 {
      %c0 = arith.constant 0 : index
      %c0_6 = arith.constant 0 : index
      %c0_7 = arith.constant 0 : index
      %12 = vector.load %arg2[%c0, %c0_6, %c0_7] : memref<2x8x32xf32, #tpu.memory_space<vmem>>, vector<2x8x32xf32>
      %c0_8 = arith.constant 0 : index
      %c0_9 = arith.constant 0 : index
      %13 = vector.load %arg11[%c0_8, %c0_9] : memref<2x32xf32, #tpu.memory_space<vmem>>, vector<2x32xf32>
      %cst = arith.constant dense<0.000000e+00> : vector<2x32xf32>
      %14 = vector.multi_reduction <add>, %12, %cst [1] : vector<2x8x32xf32> to vector<2x32xf32>
      %15 = arith.addf %13, %14 : vector<2x32xf32>
      %c0_10 = arith.constant 0 : index
      %c0_11 = arith.constant 0 : index
      %16 = vector.load %arg11[%c0_10, %c0_11] : memref<2x32xf32, #tpu.memory_space<vmem>>, vector<2x32xf32>
      tpu.vector_store %arg11[%c0_10, %c0_11], %15 {strides = array<i32>} : memref<2x32xf32, #tpu.memory_space<vmem>>, vector<2x32xf32>,
    } else {
    }
    %c2_i32_2 = arith.constant 2 : i32
    %6 = arith.cmpi eq, %arg1, %c2_i32_2 : i32
    %7 = arith.extui %6 : i1 to i32
    %c0_i32_3 = arith.constant 0 : i32
    %8 = arith.cmpi ne, %7, %c0_i32_3 : i32
    scf.if %8 {
      %c0 = arith.constant 0 : index
      %c0_6 = arith.constant 0 : index
      %c0_7 = arith.constant 0 : index
      %12 = vector.load %arg2[%c0, %c0_6, %c0_7] : memref<2x8x32xf32, #tpu.memory_space<vmem>>, vector<2x4x32xf32>
      %c0_8 = arith.constant 0 : index
      %c0_9 = arith.constant 0 : index
      %13 = vector.load %arg11[%c0_8, %c0_9] : memref<2x32xf32, #tpu.memory_space<vmem>>, vector<2x32xf32>
      %cst = arith.constant dense<0.000000e+00> : vector<2x32xf32>
      %14 = vector.multi_reduction <add>, %12, %cst [1] : vector<2x4x32xf32> to vector<2x32xf32>
      %15 = arith.addf %13, %14 : vector<2x32xf32>
      %c0_10 = arith.constant 0 : index
      %c0_11 = arith.constant 0 : index
      %16 = vector.load %arg11[%c0_10, %c0_11] : memref<2x32xf32, #tpu.memory_space<vmem>>, vector<2x32xf32>
      tpu.vector_store %arg11[%c0_10, %c0_11], %15 {strides = array<i32>} : memref<2x32xf32, #tpu.memory_space<vmem>>, vector<2x32xf32>,
    } else {
    }
    %c2_i32_4 = arith.constant 2 : i32
    %9 = arith.cmpi eq, %arg1, %c2_i32_4 : i32
    %10 = arith.extui %9 : i1 to i32
    %c0_i32_5 = arith.constant 0 : i32
    %11 = arith.cmpi ne, %10, %c0_i32_5 : i32
    scf.if %11 {
      %c0 = arith.constant 0 : index
      %c0_6 = arith.constant 0 : index
      %12 = vector.load %arg11[%c0, %c0_6] : memref<2x32xf32, #tpu.memory_space<vmem>>, vector<2x32xf32>
      %cst = arith.constant 5.000000e-02 : f32
      %13 = vector.broadcast %cst : f32 to vector<2x32xf32>
      %14 = arith.mulf %12, %13 : vector<2x32xf32>
      %c0_7 = arith.constant 0 : index
      %c0_8 = arith.constant 0 : index
      %15 = vector.load %arg3[%c0_7, %c0_8] : memref<32x32xf32, #tpu.memory_space<vmem>>, vector<32x32xf32>
      %cst_9 = arith.constant dense<0.000000e+00> : vector<2x32xf32>
      %16 = tpu.matmul %14, %15, %cst_9 {dimension_numbers = #tpu.dot_dimension_numbers<[1], [0], [0], [1], [0, 0, 1, 1], [], []>} : vector<2x32xf32>, vector<32x32xf32>, vector<2x32xf32> -> vector<2x32xf32>
      %c0_10 = arith.constant 0 : index
      %c0_11 = arith.constant 0 : index
      %17 = vector.load %arg4[%c0_10, %c0_11] : memref<1x32xf32, #tpu.memory_space<vmem>>, vector<1x32xf32>
      %18 = vector.broadcast %17 : vector<1x32xf32> to vector<2x32xf32>
      %19 = arith.addf %16, %18 : vector<2x32xf32>
      %20 = math.tanh %19 : vector<2x32xf32>
      %c0_12 = arith.constant 0 : index
      %c0_13 = arith.constant 0 : index
      %21 = vector.load %arg5[%c0_12, %c0_13] : memref<32x128xf32, #tpu.memory_space<vmem>>, vector<32x128xf32>
      %cst_14 = arith.constant dense<0.000000e+00> : vector<2x128xf32>
      %22 = tpu.matmul %20, %21, %cst_14 {dimension_numbers = #tpu.dot_dimension_numbers<[1], [0], [0], [1], [0, 0, 1, 1], [], []>} : vector<2x32xf32>, vector<32x128xf32>, vector<2x128xf32> -> vector<2x128xf32>
      %c0_15 = arith.constant 0 : index
      %c0_16 = arith.constant 0 : index
      %23 = vector.load %arg6[%c0_15, %c0_16] : memref<1x128xf32, #tpu.memory_space<vmem>>, vector<1x128xf32>
      %24 = vector.broadcast %23 : vector<1x128xf32> to vector<2x128xf32>
      %25 = arith.addf %22, %24 : vector<2x128xf32>
      %c0_17 = arith.constant 0 : index
      %c0_18 = arith.constant 0 : index
      %26 = vector.load %arg9[%c0_17, %c0_18] : memref<2x128xf32, #tpu.memory_space<vmem>>, vector<2x128xf32>
      tpu.vector_store %arg9[%c0_17, %c0_18], %25 {strides = array<i32>} : memref<2x128xf32, #tpu.memory_space<vmem>>, vector<2x128xf32>,
      %c0_19 = arith.constant 0 : index
      %c0_20 = arith.constant 0 : index
      %27 = vector.load %arg7[%c0_19, %c0_20] : memref<32x128xf32, #tpu.memory_space<vmem>>, vector<32x128xf32>
      %cst_21 = arith.constant dense<0.000000e+00> : vector<2x128xf32>
      %28 = tpu.matmul %14, %27, %cst_21 {dimension_numbers = #tpu.dot_dimension_numbers<[1], [0], [0], [1], [0, 0, 1, 1], [], []>} : vector<2x32xf32>, vector<32x128xf32>, vector<2x128xf32> -> vector<2x128xf32>
      %c0_22 = arith.constant 0 : index
      %c0_23 = arith.constant 0 : index
      %29 = vector.load %arg8[%c0_22, %c0_23] : memref<1x128xf32, #tpu.memory_space<vmem>>, vector<1x128xf32>
      %30 = vector.broadcast %29 : vector<1x128xf32> to vector<2x128xf32>
      %31 = arith.addf %28, %30 : vector<2x128xf32>
      %c0_24 = arith.constant 0 : index
      %c0_25 = arith.constant 0 : index
      %32 = vector.load %arg10[%c0_24, %c0_25] : memref<2x128xf32, #tpu.memory_space<vmem>>, vector<2x128xf32>
      tpu.vector_store %arg10[%c0_24, %c0_25], %31 {strides = array<i32>} : memref<2x128xf32, #tpu.memory_space<vmem>>, vector<2x128xf32>,
    } else {
    }
    return
  }
  func.func @transform_0(%arg0: i32, %arg1: i32) -> (i32, i32, i32) {
    %c0_i32 = arith.constant 0 : i32
    %c0_i32_0 = arith.constant 0 : i32
    return %arg0, %arg1, %c0_i32 : i32, i32, i32
  }
  func.func @transform_1(%arg0: i32, %arg1: i32) -> (i32, i32) {
    %c0_i32 = arith.constant 0 : i32
    %c0_i32_0 = arith.constant 0 : i32
    %c0_i32_1 = arith.constant 0 : i32
    return %c0_i32, %c0_i32_0 : i32, i32
  }
  func.func @transform_2(%arg0: i32, %arg1: i32) -> (i32, i32) {
    %c0_i32 = arith.constant 0 : i32
    %c0_i32_0 = arith.constant 0 : i32
    %c0_i32_1 = arith.constant 0 : i32
    return %c0_i32, %c0_i32_0 : i32, i32
  }
  func.func @transform_3(%arg0: i32, %arg1: i32) -> (i32, i32) {
    %c0_i32 = arith.constant 0 : i32
    %c0_i32_0 = arith.constant 0 : i32
    %c0_i32_1 = arith.constant 0 : i32
    return %c0_i32, %c0_i32_0 : i32, i32
  }
  func.func @transform_4(%arg0: i32, %arg1: i32) -> (i32, i32) {
    %c0_i32 = arith.constant 0 : i32
    %c0_i32_0 = arith.constant 0 : i32
    %c0_i32_1 = arith.constant 0 : i32
    return %c0_i32, %c0_i32_0 : i32, i32
  }
  func.func @transform_5(%arg0: i32, %arg1: i32) -> (i32, i32) {
    %c0_i32 = arith.constant 0 : i32
    %c0_i32_0 = arith.constant 0 : i32
    %c0_i32_1 = arith.constant 0 : i32
    return %c0_i32, %c0_i32_0 : i32, i32
  }
  func.func @transform_6(%arg0: i32, %arg1: i32) -> (i32, i32) {
    %c0_i32 = arith.constant 0 : i32
    %c0_i32_0 = arith.constant 0 : i32
    %c0_i32_1 = arith.constant 0 : i32
    return %c0_i32, %c0_i32_0 : i32, i32
  }
  func.func @transform_7(%arg0: i32, %arg1: i32) -> (i32, i32) {
    %c0_i32 = arith.constant 0 : i32
    %c0_i32_0 = arith.constant 0 : i32
    return %arg0, %c0_i32 : i32, i32
  }
  func.func @transform_8(%arg0: i32, %arg1: i32) -> (i32, i32) {
    %c0_i32 = arith.constant 0 : i32
    %c0_i32_0 = arith.constant 0 : i32
    return %arg0, %c0_i32 : i32, i32
  }
}

</mosaic_0001>

<bundles_post_ra>
// kernel: tpu_custom_call.1
= control target key start
LH: loop header
LB: loop body
LE: loop exit
PB: predicated region body
PF: predicated region fallthrough
CT: control target
= control target key end

     0   :  { %14 = vsyncpa [#allocation5], 0  ;;  %s1089_s0 = inlined_call_operand.vmem [shape: f32[2,20,32], index: 0, kind: input, shape index: {}]   ;;  %s1090_s1 = inlined_call_operand.vmem [shape: f32[32,32], index: 1, kind: input, shape index: {}]   ;;  %s1091_s2 = inlined_call_operand.vmem [shape: f32[1,32], index: 2, kind: input, shape index: {}]   ;;  %s1092_s3 = inlined_call_operand.vmem [shape: f32[32,128], index: 3, kind: input, shape index: {}]   ;;  %s1093_s4 = inlined_call_operand.vmem [shape: f32[1,128], index: 4, kind: input, shape index: {}]   ;;  %s1094_s5 = inlined_call_operand.hbm [shape: f32[32,128], index: 5, kind: input, shape index: {}]   ;;  %s1095_s6 = inlined_call_operand.vmem [shape: f32[1,128], index: 6, kind: input, shape index: {}]   ;;  %s1096_s7 = inlined_call_operand.hbm [shape: f32[2,128], index: 7, kind: output, shape index: {0}]   ;;  %s1097_s8 = inlined_call_operand.hbm [shape: f32[2,128], index: 8, kind: output, shape index: {1}]  }
   0x1   :  { %15 = vsyncpa [#allocation6], 0 }
   0x2   :  { %16 = vsyncpa [#allocation9], 0  ;;  %s929_s27 = smov 0   ;;  %s931_s28 = smov 0  }
   0x3   :  { %s933_s29 = smov 0   ;;  %s935_s30 = smov 0  }
   0x4   :  { %s937_s9 = smov 0  }
   0x5 LB: > { %s646_s10 = sadd.s32 4294967295, %s876_s9   ;;  %s31_s11 = sadd.s32 1, %s872_s30  ;;  %s876_s9 = sphi %s937_s9, %s22_s9   ;;  %s872_s30 = sphi %s935_s30, %s1105_s30   ;;  %s868_s29 = sphi %s933_s29, %s1104_s29   ;;  %s864_s28 = sphi %s931_s28, %s1103_s28   ;;  %s860_s27 = sphi %s929_s27, %s1102_s27  }
   0x6   : > { %p32_p0 = scmp.ge.s32.totalorder %s31_s11, 3  ;;  %s43_s12 = sadd.s32 1, %s864_s28 }
   0x7   : > { %p50_p1 = scmp.ne.s32.totalorder %s864_s28, %s860_s27  ;;  %p51_p2 = scmp.eq.s32.totalorder %s876_s9, 0 }
   0x8   : > { %s1107_s11 = smov (%p32_p0, %s31_s11), 0  ;;  %p647_p4 = scmp.ge.s32.totalorder %s876_s9, 1 }
   0x9   : > { %p962_p3 = por %p51_p2, %p50_p1  ;;  %s39_s14 = ssub.s32 %s872_s30, %s1107_s11 }
   0xa   : > { %p245_p5 = scmp.lt.s32.totalorder %s876_s9, 4  ;;  %p41_p6 = scmp.eq.s32.totalorder %s39_s14, 0 }
   0xb   : > { %p976_p8 = scmp.eq.s32.totalorder %s646_s10, 0  ;;  %s268_s20 = sshll.u32 %s1094_s5, 4  ;;  %s269_s20 = int_to_ptr.hbm [resolvable:$true] %s268_s20 }
   0xc   : > { %p970_p7 = pnand %p647_p4, %p245_p5  ;;  %s878_s21 = smov [#allocation4]  }
   0xd   : > { %s981_s17 = scalar_select %p41_p6, %s864_s28, %s43_s12  }
   0xe   : > { %p679_p9 = pneg %p970_p7  ;;  %s270_s22 = sshll.u32 %s878_s21, 4  ;;  %s271_s22 = int_to_ptr.vmem [resolvable:$true] %s270_s22 }
   0xf   : > { %s879_s23 = smov 128   ;;  %s880_s24 = smov 8  }
  0x10   : > { %p680_p10 = pnand %p976_p8, %p679_p9  ;;  %p649_p11 = scmp.ge.s32.totalorder %s876_s9, 3 }
  0x12   : > { %682 = dma.hbm_to_vmem [thread:$0]  (!%p680_p10), %s269_s20, 512, %s271_s22, [#allocation5], %s879_s23, %s879_s23, %s880_s24  }
  0x13   : > { %283 = sbr.rel (%p649_p11) target bundleno = 30 (0x1e), region = 40 }
  0x18   : > { %286 = sbr.rel (!%p962_p3) target bundleno = 30 (0x1e), region = 44  ;;  %s288_s25 = sand.u32 (%p962_p3), 1, %s864_s28  }
  0x19   : > { %s651_s26 = sshll.u32 (%p962_p3), %s872_s30, 3  ;;  %s650_s12 = sshll.u32 (%p962_p3), %s288_s25, 4 }
  0x1a   : > { %s295_s19 = scalar_lea.vmem (%p962_p3), %s1089_s0, %s651_s26  ;;  %s290_s21 = scalar_lea.vmem (%p962_p3), [#allocation3], %s650_s12 }
  0x1b   : > { %v326_v0 = vld [vmem:[%s295_s19] sm:$0xff] (%p962_p3)  ;;  %v328_v1 = vld [vmem:[%s295_s19 + $0x18] sm:$0xff] (%p962_p3) }
  0x1c   : > { %327 = vst [vmem:[%s290_s21] sm:$0xff] (%p962_p3), %v326_v0 }
  0x1d   : > { %329 = vst [vmem:[%s290_s21 + $0x8] sm:$0xff] %v328_v1 }
  0x1e PF: > { %338 = sbr.rel (%p970_p7) target bundleno = 379 (0x17b), region = 82  ;;  %s341_s13 = sand.u32 (!%p970_p7), 1, %s860_s27  }
  0x1f   : > { %s653_s20 = sshll.u32 (!%p970_p7), %s341_s13, 4 }
  0x20   : > { %s1001_s22 = scalar_lea.vmem (!%p970_p7), [#allocation3], %s653_s20 }
  0x23   : > { %847 = dma.done.wait (%p976_p8), [#allocation5], 512  }
  0x24   : > { %849 = vsyncadd (%p976_p8), [#allocation5], 4294966784  ;;  %p655_p12 = scmp.ne.s32.totalorder %s868_s29, 0 }
  0x26   : > { %378 = sbr.rel (%p655_p12) target bundleno = 45 (0x2d), region = 94 }
  0x2b   : > { %vm379_vm0 = vcmask 254976   ;;  %v881_v2 = vmov 0.0  }
  0x2c   : > { %380 = vst.msk [vmem:[#allocation2] sm:$0x3] %vm379_vm0, %v881_v2 }
  0x2d PF: > { %p656_p13 = scmp.ge.s32.totalorder %s868_s29, 2 }
  0x2f   : > { %384 = sbr.rel (%p656_p13) target bundleno = 70 (0x46), region = 98 }
  0x34   : > { %v385_v3 = vld [vmem:[%s1001_s22] sm:$0xff]  ;;  %v386_v4 = vld [vmem:[%s1001_s22 + $0x8] sm:$0xff]  ;;  %vm388_vm1 = vcmask 261120   ;;  %vm405_vm2 = vcmask 1041409   ;;  %vm409_vm3 = vcmask 254976  }
  0x35   : > { %v389_v5 = vsel %vm388_vm1, %v385_v3, 0.0  ;;  %v396_v6 = vsel %vm388_vm1, %v386_v4, 0.0  ;;  %v387_v17 = vld [vmem:[#allocation2] sm:$0x3] }
  0x36   : > { %v390_v7 = vrot.slane %v389_v5, 4  ;;  %v397_v8 = vrot.slane %v396_v6, 4 }
  0x38   : > { %v391_v9 = vadd.f32 %v390_v7, %v389_v5  ;;  %v398_v10 = vadd.f32 %v397_v8, %v396_v6 }
  0x3a   : > { %v392_v11 = vrot.slane %v391_v9, 2  ;;  %v399_v12 = vrot.slane %v398_v10, 2 }
  0x3c   : > { %v393_v13 = vadd.f32 %v392_v11, %v391_v9  ;;  %v400_v14 = vadd.f32 %v399_v12, %v398_v10 }
  0x3e   : > { %v394_v15 = vrot.slane %v393_v13, 1  ;;  %v401_v16 = vrot.slane %v400_v14, 1 }
  0x40   : > { %v395_v18 = vadd.f32 %v394_v15, %v393_v13  ;;  %v402_v19 = vadd.f32 %v401_v16, %v400_v14 }
  0x42   : > { %v406_v20 = vsel %vm405_vm2, %v402_v19, %v395_v18 }
  0x43   : > { %v408_v21 = vadd.f32 %v406_v20, %v387_v17 }
  0x45   : > { %410 = vst.msk [vmem:[#allocation2] sm:$0x3] %vm409_vm3, %v408_v21 }
  0x46 PF: > { %p657_p0 = scmp.ne.s32.totalorder %s868_s29, 2 }
  0x48   : > { %414 = sbr.rel (%p657_p0) target bundleno = 369 (0x171), region = 102 }
  0x4d   : > { %v446_v22 = vld [vmem:[%s1090_s1 + $0x18] sm:$0xff]  ;;  %v445_v23 = vld [vmem:[%s1090_s1 + $0x10] sm:$0xff]  ;;  %vm418_vm4 = vcmask 257024   ;;  %v444_v26 = vld [vmem:[%s1090_s1 + $0x8] sm:$0xff]  ;;  %vm435_vm5 = vcmask 1041409   ;;  %vm439_vm6 = vcmask 254976  }
  0x4e   : > { %467 = vmatpush.msra.mxu0 %v446_v22  ;;  %v415_v24 = vld [vmem:[%s1001_s22] sm:$0xf]  ;;  %v416_v25 = vld [vmem:[%s1001_s22 + $0x8] sm:$0xf]  ;;  %v417_v42 = vld [vmem:[#allocation2] sm:$0x3] }
  0x4f   : > { %v419_v27 = vsel %vm418_vm4, %v415_v24, 0.0  ;;  %v426_v28 = vsel %vm418_vm4, %v416_v25, 0.0  ;;  %v511_v29 = vld [vmem:[#allocation4 + $0x18] sm:$0xff]  ;;  %v510_v30 = vld [vmem:[#allocation4 + $0x10] sm:$0xff]  ;;  %vm451_vm7 = vcmask 261120   ;;  %v509_v49 = vld [vmem:[#allocation4 + $0x8] sm:$0xff] }
  0x50   : > { %468 = vmatpush.msra.mxu0 %v445_v23  ;;  %v420_v31 = vrot.slane %v419_v27, 4  ;;  %v427_v32 = vrot.slane %v426_v28, 4  ;;  %528 = vmatpush.msra.mxu2 %v511_v29  ;;  %v443_v33 = vld [vmem:[%s1090_s1] sm:$0xff]  ;;  %v479_v50 = vld [vmem:[%s1092_s3 + $0x18] sm:$0xff]  ;;  %v478_v52 = vld [vmem:[%s1092_s3 + $0x10] sm:$0xff] }
  0x51   : > { %v508_v51 = vld [vmem:[#allocation4] sm:$0xff]  ;;  %499 = vmatpush.msra.mxu1 %v479_v50  ;;  %v735_v55 = vld [vmem:[%s1091_s2] ss:$0 sm:$0xff] }
  0x52   : > { %469 = vmatpush.msra.mxu0 %v444_v26  ;;  %v421_v34 = vadd.f32 %v420_v31, %v419_v27  ;;  %v428_v35 = vadd.f32 %v427_v32, %v426_v28  ;;  %529 = vmatpush.msra.mxu2 %v510_v30  ;;  %v477_v53 = vld [vmem:[%s1092_s3 + $0x8] sm:$0xff]  ;;  %v476_v54 = vld [vmem:[%s1092_s3] sm:$0xff] }
  0x53   : > { %500 = vmatpush.msra.mxu1 %v478_v52  ;;  %v737_v59 = vld [vmem:[%s1095_s6] ss:$0 sm:$0xff] }
  0x54   : > { %470 = vmatpush.msra.mxu0 %v443_v33  ;;  %v422_v36 = vrot.slane %v421_v34, 2  ;;  %v429_v37 = vrot.slane %v428_v35, 2  ;;  %530 = vmatpush.msra.mxu2 %v509_v49  ;;  %v736_v62 = vld [vmem:[%s1093_s4] ss:$0 sm:$0xff] }
  0x55   : > { %501 = vmatpush.msra.mxu1 %v477_v53 }
  0x56   : > { %v423_v38 = vadd.f32 %v422_v36, %v421_v34  ;;  %v430_v39 = vadd.f32 %v429_v37, %v428_v35  ;;  %531 = vmatpush.msra.mxu2 %v508_v51 }
  0x57   : > { %502 = vmatpush.msra.mxu1 %v476_v54 }
  0x58   : > { %v424_v40 = vrot.slane %v423_v38, 1  ;;  %v431_v41 = vrot.slane %v430_v39, 1 }
  0x5a   : > { %v425_v43 = vadd.f32 %v424_v40, %v423_v38  ;;  %v432_v44 = vadd.f32 %v431_v41, %v430_v39 }
  0x5c   : > { %v436_v45 = vsel %vm435_vm5, %v432_v44, %v425_v43 }
  0x5d   : > { %v438_v46 = vadd.f32 %v436_v45, %v417_v42 }
  0x5f   : > { %440 = vst.msk [vmem:[#allocation2] sm:$0x3] %vm439_vm6, %v438_v46 }
  0x66   : > { %v441_v47 = vld [vmem:[#allocation2] sm:$0x3] }
  0x67   : > { %v442_v48 = vmul.f32 0.05, %v441_v47 }
  0x69   : > { %658 = vmatmul.msk.f32.vlgmr.msra.gmra.mxu0 %vm451_vm7, %v442_v48  ;;  %660 = vmatmul.msk.f32.vlgmr.msra.gmra.mxu2 %vm451_vm7, %v442_v48 }
  0xe6   : > { %v472_v56 = vpop.f32.mrf.mxu0 }
  0xe7   : > { %v473_v57 = vadd.f32 %v735_v55, %v472_v56 }
  0xe9   : > { %738 = vtanh.f32 %v473_v57 }
  0xec   : > { %v533_v60 = vpop.f32.mrf.mxu2 }
  0xed   : > { %v534_v61 = vadd.f32 %v737_v59, %v533_v60 }
  0xef   : > { %v739_v58 = vpop.eup %738  ;;  %536 = vst [vmem:[#allocation8] sm:$0x3] %v534_v61 }
  0xf0   : > { %659 = vmatmul.msk.f32.vlgmr.msra.gmra.mxu1 %vm451_vm7, %v739_v58 }
 0x16d   : > { %v504_v63 = vpop.f32.mrf.mxu1 }
 0x16e   : > { %v505_v0 = vadd.f32 %v736_v62, %v504_v63 }
 0x170   : > { %507 = vst [vmem:[#allocation7] sm:$0x3] %v505_v0 }
 0x171 PF: > { %p1052_p1 = scmp.eq.s32.totalorder %s646_s10, 2  ;;  %s547_s14 = sshll.u32 %s1096_s7, 4  ;;  %s548_s14 = int_to_ptr.hbm [resolvable:$true] %s547_s14 }
 0x172   : > { %s882_s18 = smov [#allocation7]   ;;  %s883_s21 = smov [#allocation8]  }
 0x173   : > { %s545_s19 = sshll.u32 %s882_s18, 4  ;;  %s559_s13 = sshll.u32 %s883_s21, 4  ;;  %s546_s19 = int_to_ptr.vmem [resolvable:$true] %s545_s19  ;;  %s560_s13 = int_to_ptr.vmem [resolvable:$true] %s559_s13 }
 0x174   : > { %672 = dma.vmem_to_hbm [thread:$0]  (%p1052_p1), %s546_s19, 32, %s548_s14, [#allocation6]  }
 0x175   : > { %s561_s22 = sshll.u32 %s1097_s8, 4  ;;  %s562_s22 = int_to_ptr.hbm [resolvable:$true] %s561_s22 }
 0x176   : > { %674 = dma.vmem_to_hbm [thread:$0]  (%p1052_p1), %s560_s13, 32, %s562_s22, [#allocation9]  }
 0x177   : > { %851 = dma.done.wait (%p1052_p1), [#allocation6], 32  }
 0x178   : > { %853 = vsyncadd (%p1052_p1), [#allocation6], 4294967264 }
 0x179   : > { %855 = dma.done.wait (%p1052_p1), [#allocation9], 32  }
 0x17a   : > { %857 = vsyncadd (%p1052_p1), [#allocation9], 4294967264 }
 0x17b PF: > { %s22_s9 = sadd.s32 1, %s876_s9   ;;  %s1102_s27 = smov %s864_s28 }
 0x17c   : > { %p19_p2 = scmp.ge.s32.totalorder %s22_s9, 5   ;;  %s1103_s28 = smov %s981_s17 }
 0x17d   : > { %s1104_s29 = smov %s872_s30  ;;  %s1105_s30 = smov %s1107_s11 }
 0x17e   :  { %21 = sbr.rel (!%p19_p2) target bundleno = 5 (0x5), region = 145 }
 0x183   :  { %580 = vsyncpa [#allocation5], 1 }
 0x184   :  { %582 = vsyncpa [#allocation5 + $0x1], 1 }
 0x185   :  { %583 = vsyncpa [#allocation6], 1 }
 0x186   :  { %585 = vsyncpa [#allocation6 + $0x1], 1 }
 0x187   :  { %586 = vsyncpa [#allocation9], 1 }

// kernel: tpu_custom_call.1
= control target key start
LH: loop header
LB: loop body
LE: loop exit
PB: predicated region body
PF: predicated region fallthrough
CT: control target
= control target key end

     0   :  { %14 = vsyncpa [#allocation5], 0  ;;  %s1089_s0 = inlined_call_operand.vmem [shape: f32[2,20,32], index: 0, kind: input, shape index: {}]   ;;  %s1090_s1 = inlined_call_operand.vmem [shape: f32[32,32], index: 1, kind: input, shape index: {}]   ;;  %s1091_s2 = inlined_call_operand.vmem [shape: f32[1,32], index: 2, kind: input, shape index: {}]   ;;  %s1092_s3 = inlined_call_operand.vmem [shape: f32[32,128], index: 3, kind: input, shape index: {}]   ;;  %s1093_s4 = inlined_call_operand.vmem [shape: f32[1,128], index: 4, kind: input, shape index: {}]   ;;  %s1094_s5 = inlined_call_operand.hbm [shape: f32[32,128], index: 5, kind: input, shape index: {}]   ;;  %s1095_s6 = inlined_call_operand.vmem [shape: f32[1,128], index: 6, kind: input, shape index: {}]   ;;  %s1096_s7 = inlined_call_operand.hbm [shape: f32[2,128], index: 7, kind: output, shape index: {0}]   ;;  %s1097_s8 = inlined_call_operand.hbm [shape: f32[2,128], index: 8, kind: output, shape index: {1}]  }
   0x1   :  { %15 = vsyncpa [#allocation6], 0 }
   0x2   :  { %16 = vsyncpa [#allocation9], 0  ;;  %s929_s27 = smov 0   ;;  %s931_s28 = smov 0  }
   0x3   :  { %s933_s29 = smov 0   ;;  %s935_s30 = smov 0  }
   0x4   :  { %s937_s9 = smov 0  }
   0x5 LB: > { %s646_s10 = sadd.s32 4294967295, %s876_s9   ;;  %s31_s11 = sadd.s32 1, %s872_s30  ;;  %s876_s9 = sphi %s937_s9, %s22_s9   ;;  %s872_s30 = sphi %s935_s30, %s1105_s30   ;;  %s868_s29 = sphi %s933_s29, %s1104_s29   ;;  %s864_s28 = sphi %s931_s28, %s1103_s28   ;;  %s860_s27 = sphi %s929_s27, %s1102_s27  }
   0x6   : > { %p32_p0 = scmp.ge.s32.totalorder %s31_s11, 3  ;;  %s43_s12 = sadd.s32 1, %s864_s28 }
   0x7   : > { %p50_p1 = scmp.ne.s32.totalorder %s864_s28, %s860_s27  ;;  %p51_p2 = scmp.eq.s32.totalorder %s876_s9, 0 }
   0x8   : > { %s1107_s11 = smov (%p32_p0, %s31_s11), 0  ;;  %p647_p4 = scmp.ge.s32.totalorder %s876_s9, 1 }
   0x9   : > { %p962_p3 = por %p51_p2, %p50_p1  ;;  %s39_s14 = ssub.s32 %s872_s30, %s1107_s11 }
   0xa   : > { %p245_p5 = scmp.lt.s32.totalorder %s876_s9, 4  ;;  %p41_p6 = scmp.eq.s32.totalorder %s39_s14, 0 }
   0xb   : > { %p976_p8 = scmp.eq.s32.totalorder %s646_s10, 0  ;;  %s268_s20 = sshll.u32 %s1094_s5, 4  ;;  %s269_s20 = int_to_ptr.hbm [resolvable:$true] %s268_s20 }
   0xc   : > { %p970_p7 = pnand %p647_p4, %p245_p5  ;;  %s878_s21 = smov [#allocation4]  }
   0xd   : > { %s981_s17 = scalar_select %p41_p6, %s864_s28, %s43_s12  }
   0xe   : > { %p679_p9 = pneg %p970_p7  ;;  %s270_s22 = sshll.u32 %s878_s21, 4  ;;  %s271_s22 = int_to_ptr.vmem [resolvable:$true] %s270_s22 }
   0xf   : > { %s879_s23 = smov 128   ;;  %s880_s24 = smov 8  }
  0x10   : > { %p680_p10 = pnand %p976_p8, %p679_p9  ;;  %p649_p11 = scmp.ge.s32.totalorder %s876_s9, 3 }
  0x12   : > { %682 = dma.hbm_to_vmem [thread:$0]  (!%p680_p10), %s269_s20, 512, %s271_s22, [#allocation5], %s879_s23, %s879_s23, %s880_s24  }
  0x13   : > { %283 = sbr.rel (%p649_p11) target bundleno = 30 (0x1e), region = 40 }
  0x18   : > { %286 = sbr.rel (!%p962_p3) target bundleno = 30 (0x1e), region = 44  ;;  %s288_s25 = sand.u32 (%p962_p3), 1, %s864_s28  }
  0x19   : > { %s651_s26 = sshll.u32 (%p962_p3), %s872_s30, 3  ;;  %s650_s12 = sshll.u32 (%p962_p3), %s288_s25, 4 }
  0x1a   : > { %s295_s19 = scalar_lea.vmem (%p962_p3), %s1089_s0, %s651_s26  ;;  %s290_s21 = scalar_lea.vmem (%p962_p3), [#allocation3], %s650_s12 }
  0x1b   : > { %v326_v0 = vld [vmem:[%s295_s19] sm:$0xff] (%p962_p3)  ;;  %v328_v1 = vld [vmem:[%s295_s19 + $0x18] sm:$0xff] (%p962_p3) }
  0x1c   : > { %327 = vst [vmem:[%s290_s21] sm:$0xff] (%p962_p3), %v326_v0 }
  0x1d   : > { %329 = vst [vmem:[%s290_s21 + $0x8] sm:$0xff] %v328_v1 }
  0x1e PF: > { %338 = sbr.rel (%p970_p7) target bundleno = 379 (0x17b), region = 82  ;;  %s341_s13 = sand.u32 (!%p970_p7), 1, %s860_s27  }
  0x1f   : > { %s653_s20 = sshll.u32 (!%p970_p7), %s341_s13, 4 }
  0x20   : > { %s1001_s22 = scalar_lea.vmem (!%p970_p7), [#allocation3], %s653_s20 }
  0x23   : > { %847 = dma.done.wait (%p976_p8), [#allocation5], 512  }
  0x24   : > { %849 = vsyncadd (%p976_p8), [#allocation5], 4294966784  ;;  %p655_p12 = scmp.ne.s32.totalorder %s868_s29, 0 }
  0x26   : > { %378 = sbr.rel (%p655_p12) target bundleno = 45 (0x2d), region = 94 }
  0x2b   : > { %vm379_vm0 = vcmask 254976   ;;  %v881_v2 = vmov 0.0  }
  0x2c   : > { %380 = vst.msk [vmem:[#allocation2] sm:$0x3] %vm379_vm0, %v881_v2 }
  0x2d PF: > { %p656_p13 = scmp.ge.s32.totalorder %s868_s29, 2 }
  0x2f   : > { %384 = sbr.rel (%p656_p13) target bundleno = 70 (0x46), region = 98 }
  0x34   : > { %v385_v3 = vld [vmem:[%s1001_s22] sm:$0xff]  ;;  %v386_v4 = vld [vmem:[%s1001_s22 + $0x8] sm:$0xff]  ;;  %vm388_vm1 = vcmask 261120   ;;  %vm405_vm2 = vcmask 1041409   ;;  %vm409_vm3 = vcmask 254976  }
  0x35   : > { %v389_v5 = vsel %vm388_vm1, %v385_v3, 0.0  ;;  %v396_v6 = vsel %vm388_vm1, %v386_v4, 0.0  ;;  %v387_v17 = vld [vmem:[#allocation2] sm:$0x3] }
  0x36   : > { %v390_v7 = vrot.slane %v389_v5, 4  ;;  %v397_v8 = vrot.slane %v396_v6, 4 }
  0x38   : > { %v391_v9 = vadd.f32 %v390_v7, %v389_v5  ;;  %v398_v10 = vadd.f32 %v397_v8, %v396_v6 }
  0x3a   : > { %v392_v11 = vrot.slane %v391_v9, 2  ;;  %v399_v12 = vrot.slane %v398_v10, 2 }
  0x3c   : > { %v393_v13 = vadd.f32 %v392_v11, %v391_v9  ;;  %v400_v14 = vadd.f32 %v399_v12, %v398_v10 }
  0x3e   : > { %v394_v15 = vrot.slane %v393_v13, 1  ;;  %v401_v16 = vrot.slane %v400_v14, 1 }
  0x40   : > { %v395_v18 = vadd.f32 %v394_v15, %v393_v13  ;;  %v402_v19 = vadd.f32 %v401_v16, %v400_v14 }
  0x42   : > { %v406_v20 = vsel %vm405_vm2, %v402_v19, %v395_v18 }
  0x43   : > { %v408_v21 = vadd.f32 %v406_v20, %v387_v17 }
  0x45   : > { %410 = vst.msk [vmem:[#allocation2] sm:$0x3] %vm409_vm3, %v408_v21 }
  0x46 PF: > { %p657_p0 = scmp.ne.s32.totalorder %s868_s29, 2 }
  0x48   : > { %414 = sbr.rel (%p657_p0) target bundleno = 369 (0x171), region = 102 }
  0x4d   : > { %v446_v22 = vld [vmem:[%s1090_s1 + $0x18] sm:$0xff]  ;;  %v445_v23 = vld [vmem:[%s1090_s1 + $0x10] sm:$0xff]  ;;  %vm418_vm4 = vcmask 257024   ;;  %v444_v26 = vld [vmem:[%s1090_s1 + $0x8] sm:$0xff]  ;;  %vm435_vm5 = vcmask 1041409   ;;  %vm439_vm6 = vcmask 254976  }
  0x4e   : > { %467 = vmatpush.msra.mxu0 %v446_v22  ;;  %v415_v24 = vld [vmem:[%s1001_s22] sm:$0xf]  ;;  %v416_v25 = vld [vmem:[%s1001_s22 + $0x8] sm:$0xf]  ;;  %v417_v42 = vld [vmem:[#allocation2] sm:$0x3] }
  0x4f   : > { %v419_v27 = vsel %vm418_vm4, %v415_v24, 0.0  ;;  %v426_v28 = vsel %vm418_vm4, %v416_v25, 0.0  ;;  %v511_v29 = vld [vmem:[#allocation4 + $0x18] sm:$0xff]  ;;  %v510_v30 = vld [vmem:[#allocation4 + $0x10] sm:$0xff]  ;;  %vm451_vm7 = vcmask 261120   ;;  %v509_v49 = vld [vmem:[#allocation4 + $0x8] sm:$0xff] }
  0x50   : > { %468 = vmatpush.msra.mxu0 %v445_v23  ;;  %v420_v31 = vrot.slane %v419_v27, 4  ;;  %v427_v32 = vrot.slane %v426_v28, 4  ;;  %528 = vmatpush.msra.mxu2 %v511_v29  ;;  %v443_v33 = vld [vmem:[%s1090_s1] sm:$0xff]  ;;  %v479_v50 = vld [vmem:[%s1092_s3 + $0x18] sm:$0xff]  ;;  %v478_v52 = vld [vmem:[%s1092_s3 + $0x10] sm:$0xff] }
  0x51   : > { %v508_v51 = vld [vmem:[#allocation4] sm:$0xff]  ;;  %499 = vmatpush.msra.mxu1 %v479_v50  ;;  %v735_v55 = vld [vmem:[%s1091_s2] ss:$0 sm:$0xff] }
  0x52   : > { %469 = vmatpush.msra.mxu0 %v444_v26  ;;  %v421_v34 = vadd.f32 %v420_v31, %v419_v27  ;;  %v428_v35 = vadd.f32 %v427_v32, %v426_v28  ;;  %529 = vmatpush.msra.mxu2 %v510_v30  ;;  %v477_v53 = vld [vmem:[%s1092_s3 + $0x8] sm:$0xff]  ;;  %v476_v54 = vld [vmem:[%s1092_s3] sm:$0xff] }
  0x53   : > { %500 = vmatpush.msra.mxu1 %v478_v52  ;;  %v737_v59 = vld [vmem:[%s1095_s6] ss:$0 sm:$0xff] }
  0x54   : > { %470 = vmatpush.msra.mxu0 %v443_v33  ;;  %v422_v36 = vrot.slane %v421_v34, 2  ;;  %v429_v37 = vrot.slane %v428_v35, 2  ;;  %530 = vmatpush.msra.mxu2 %v509_v49  ;;  %v736_v62 = vld [vmem:[%s1093_s4] ss:$0 sm:$0xff] }
  0x55   : > { %501 = vmatpush.msra.mxu1 %v477_v53 }
  0x56   : > { %v423_v38 = vadd.f32 %v422_v36, %v421_v34  ;;  %v430_v39 = vadd.f32 %v429_v37, %v428_v35  ;;  %531 = vmatpush.msra.mxu2 %v508_v51 }
  0x57   : > { %502 = vmatpush.msra.mxu1 %v476_v54 }
  0x58   : > { %v424_v40 = vrot.slane %v423_v38, 1  ;;  %v431_v41 = vrot.slane %v430_v39, 1 }
  0x5a   : > { %v425_v43 = vadd.f32 %v424_v40, %v423_v38  ;;  %v432_v44 = vadd.f32 %v431_v41, %v430_v39 }
  0x5c   : > { %v436_v45 = vsel %vm435_vm5, %v432_v44, %v425_v43 }
  0x5d   : > { %v438_v46 = vadd.f32 %v436_v45, %v417_v42 }
  0x5f   : > { %440 = vst.msk [vmem:[#allocation2] sm:$0x3] %vm439_vm6, %v438_v46 }
  0x66   : > { %v441_v47 = vld [vmem:[#allocation2] sm:$0x3] }
  0x67   : > { %v442_v48 = vmul.f32 0.05, %v441_v47 }
  0x69   : > { %658 = vmatmul.msk.f32.vlgmr.msra.gmra.mxu0 %vm451_vm7, %v442_v48  ;;  %660 = vmatmul.msk.f32.vlgmr.msra.gmra.mxu2 %vm451_vm7, %v442_v48 }
  0xe6   : > { %v472_v56 = vpop.f32.mrf.mxu0 }
  0xe7   : > { %v473_v57 = vadd.f32 %v735_v55, %v472_v56 }
  0xe9   : > { %738 = vtanh.f32 %v473_v57 }
  0xec   : > { %v533_v60 = vpop.f32.mrf.mxu2 }
  0xed   : > { %v534_v61 = vadd.f32 %v737_v59, %v533_v60 }
  0xef   : > { %v739_v58 = vpop.eup %738  ;;  %536 = vst [vmem:[#allocation8] sm:$0x3] %v534_v61 }
  0xf0   : > { %659 = vmatmul.msk.f32.vlgmr.msra.gmra.mxu1 %vm451_vm7, %v739_v58 }
 0x16d   : > { %v504_v63 = vpop.f32.mrf.mxu1 }
 0x16e   : > { %v505_v0 = vadd.f32 %v736_v62, %v504_v63 }
 0x170   : > { %507 = vst [vmem:[#allocation7] sm:$0x3] %v505_v0 }
 0x171 PF: > { %p1052_p1 = scmp.eq.s32.totalorder %s646_s10, 2  ;;  %s547_s14 = sshll.u32 %s1096_s7, 4  ;;  %s548_s14 = int_to_ptr.hbm [resolvable:$true] %s547_s14 }
 0x172   : > { %s882_s18 = smov [#allocation7]   ;;  %s883_s21 = smov [#allocation8]  }
 0x173   : > { %s545_s19 = sshll.u32 %s882_s18, 4  ;;  %s559_s13 = sshll.u32 %s883_s21, 4  ;;  %s546_s19 = int_to_ptr.vmem [resolvable:$true] %s545_s19  ;;  %s560_s13 = int_to_ptr.vmem [resolvable:$true] %s559_s13 }
 0x174   : > { %672 = dma.vmem_to_hbm [thread:$0]  (%p1052_p1), %s546_s19, 32, %s548_s14, [#allocation6]  }
 0x175   : > { %s561_s22 = sshll.u32 %s1097_s8, 4  ;;  %s562_s22 = int_to_ptr.hbm [resolvable:$true] %s561_s22 }
 0x176   : > { %674 = dma.vmem_to_hbm [thread:$0]  (%p1052_p1), %s560_s13, 32, %s562_s22, [#allocation9]  }
 0x177   : > { %851 = dma.done.wait (%p1052_p1), [#allocation6], 32  }
 0x178   : > { %853 = vsyncadd (%p1052_p1), [#allocation6], 4294967264 }
 0x179   : > { %855 = dma.done.wait (%p1052_p1), [#allocation9], 32  }
 0x17a   : > { %857 = vsyncadd (%p1052_p1), [#allocation9], 4294967264 }
 0x17b PF: > { %s22_s9 = sadd.s32 1, %s876_s9   ;;  %s1102_s27 = smov %s864_s28 }
 0x17c   : > { %p19_p2 = scmp.ge.s32.totalorder %s22_s9, 5   ;;  %s1103_s28 = smov %s981_s17 }
 0x17d   : > { %s1104_s29 = smov %s872_s30  ;;  %s1105_s30 = smov %s1107_s11 }
 0x17e   :  { %21 = sbr.rel (!%p19_p2) target bundleno = 5 (0x5), region = 145 }
 0x183   :  { %580 = vsyncpa [#allocation5], 1 }
 0x184   :  { %582 = vsyncpa [#allocation5 + $0x1], 1 }
 0x185   :  { %583 = vsyncpa [#allocation6], 1 }
 0x186   :  { %585 = vsyncpa [#allocation6 + $0x1], 1 }
 0x187   :  { %586 = vsyncpa [#allocation9], 1 }

</bundles_post_ra>
